<compile_context>
chip_gen: v7x
topology: tpu7x:2x2x1
jax: 0.10.0
libtpu: 0.0.40
codegen_flags: <defaults>
</compile_context>

<pallas_src>
import functools

import jax
import jax.numpy as jnp
from jax.experimental import pallas as pl
from jax.experimental.pallas import tpu as pltpu

LANE = 128            # TPU lane width: feature dims padded to multiples of this
BATCH_ALIGN = 16      # bf16 sublane packing: batch tiles aligned to 16 rows
MAX_BATCH_TILE = 1024 # upper cap on the batch tile (amortizes per-step overhead
                      # on v5e/v6e without risking huge live ranges)


def _round_up(n, m):
    return (n + m - 1) // m * m


@functools.lru_cache(maxsize=None)
def _vmem_budget_bytes():
    """Generation-aware VMEM budget with headroom (v7x: 64 MiB/TC, v5e/v6e: 128 MiB)."""
    try:
        cap = int(pltpu.get_tpu_info().vmem_capacity_bytes)
    except Exception:
        cap = 64 * 1024 * 1024  # conservative fallback (v7x per-TC)
    return max(32 * 1024 * 1024, min(int(cap * 0.8), cap - 12 * 1024 * 1024))


# ----------------------------------------------------------------------------
# Kernel: fused 5-layer MLP on one batch tile. Weights/biases have constant
# index_maps (DMA'd once, VMEM-resident); activations stay on-chip between
# layers. Matmuls take bf16 inputs on the MXU with f32 accumulation; bias-add
# and ReLU run in f32 on the VPU.
# ----------------------------------------------------------------------------
def _mlp_kernel(x_ref, *refs):
    o_ref = refs[-1]
    param_refs = refs[:-1]
    n_layers = len(param_refs) // 2

    h = x_ref[...]                          # bf16, streamed straight to the MXU
    for layer in range(n_layers):
        w_ref = param_refs[2 * layer]       # (in_pad, out_pad)  bf16, resident
        b_ref = param_refs[2 * layer + 1]   # (1,      out_pad)  f32,  resident
        h = jnp.dot(h, w_ref[...], preferred_element_type=jnp.float32)
        h = h + b_ref[...]                  # f32 bias add (broadcast over rows)
        if layer < n_layers - 1:
            # ReLU in f32, then bf16 for the next MXU matmul.
            h = jnp.maximum(h, 0.0).astype(jnp.bfloat16)
    o_ref[...] = h.astype(o_ref.dtype)


# ----------------------------------------------------------------------------
# Parameter init (PyTorch nn.Linear style) and one-time preparation.
# ----------------------------------------------------------------------------
def init_explicit_decoder_params(key, in_dim, hidden_channels, out_dim,
                                 dtype=jnp.float32):
    """PyTorch-style uniform(+/- 1/sqrt(fan_in)) init; weights are (out, in)."""
    sizes = [in_dim] + list(hidden_channels) + [out_dim]
    params = []
    for i in range(len(sizes) - 1):
        fan_in, fan_out = sizes[i], sizes[i + 1]
        key, kw, kb = jax.random.split(key, 3)
        bound = 1.0 / jnp.sqrt(jnp.asarray(fan_in, dtype=jnp.float32))
        w = jax.random.uniform(kw, (fan_out, fan_in), dtype=dtype,
                               minval=-bound, maxval=bound)
        b = jax.random.uniform(kb, (fan_out,), dtype=dtype,
                               minval=-bound, maxval=bound)
        params.append((w, b))
    return params


def prepare_params(params):
    """One-time (outside jit) prep: transpose to (in, out), zero-pad every
    feature dim to a multiple of 128 (lane-dense), cast weights to bf16.
    Padded weight rows/cols and bias lanes are zero, so results are exact
    modulo bf16 rounding of the real entries."""
    sizes = [params[0][0].shape[1]] + [w.shape[0] for w, _ in params]
    padded = [_round_up(s, LANE) for s in sizes]
    prepared = []
    for idx, (w, b) in enumerate(params):
        fan_out, fan_in = w.shape
        in_p, out_p = padded[idx], padded[idx + 1]
        wt = jnp.zeros((in_p, out_p), jnp.float32)
        wt = wt.at[:fan_in, :fan_out].set(jnp.transpose(w).astype(jnp.float32))
        bp = jnp.zeros((1, out_p), jnp.float32)
        bp = bp.at[0, :fan_out].set(b.astype(jnp.float32))
        prepared.append((wt.astype(jnp.bfloat16), bp))
    return prepared


# ----------------------------------------------------------------------------
# Forward
# ----------------------------------------------------------------------------
@functools.partial(jax.jit, static_argnames=("out_dim",))
def explicit_decoder_forward(x, prepared_params, out_dim):
    """JAX/Pallas equivalent of ExplicitDecoder.forward.

    x: (B, C, H, W) (or any (B, ...)) -> flatten -> fused MLP -> (B, out_dim).
    `prepared_params` must come from prepare_params() (called once, outside jit).
    """
    B = x.shape[0]
    xf = x.reshape(B, -1)
    in_dim = xf.shape[1]
    in_pad = prepared_params[0][0].shape[0]
    out_pad = prepared_params[-1][0].shape[1]
    assert in_dim <= in_pad, (in_dim, in_pad)

    # Stream the input as bf16: the kernel feeds it straight into the MXU, so
    # this is numerically identical but halves x HBM/VMEM traffic.
    xf = xf.astype(jnp.bfloat16)

    # --- in_pad-aware, generation-aware batch-tile sizing -------------------
    budget = _vmem_budget_bytes()
    # Resident parameters (bf16 weights + f32 biases); counted x2 because the
    # default pipeline double-buffers every input, even constant-index ones.
    fixed = 2 * sum(w.size * w.dtype.itemsize + b.size * b.dtype.itemsize
                    for w, b in prepared_params)
    feat_dims = [in_pad] + [int(w.shape[1]) for w, _ in prepared_params]
    max_feat = max(feat_dims)
    # Per-batch-row bytes: 2x-buffered bf16 x tile + 2x-buffered f32 out tile
    # + ~3 live activation rows (f32) inside the kernel.
    per_row = 2 * in_pad * 2 + 2 * out_pad * 4 + 3 * max_feat * 4
    tb_vmem = (budget - fixed) // per_row
    if tb_vmem < BATCH_ALIGN:
        # TODO(synk): for very large flattened inputs, tile the first layer's K
        # dim (trailing "arbitrary" reduction grid axis + f32 VMEM accumulator)
        # instead of keeping every weight VMEM-resident.
        raise ValueError("ExplicitDecoder weights do not fit in VMEM alongside "
                         "a minimal batch tile; first-layer K-tiling needed.")
    tb_vmem = tb_vmem // BATCH_ALIGN * BATCH_ALIGN

    b_ceil = _round_up(B, BATCH_ALIGN)
    tb_cap = min(tb_vmem, MAX_BATCH_TILE, b_ceil)
    # At least 2 grid steps when the batch is big enough, so v7x's two
    # TensorCores both get work ("parallel" axis). Balance the tile across
    # steps to minimize batch padding waste.
    min_steps = 2 if b_ceil >= 2 * BATCH_ALIGN else 1
    steps = max(min_steps, pl.cdiv(b_ceil, tb_cap))
    tb = min(_round_up(pl.cdiv(B, steps), BATCH_ALIGN), tb_cap)
    b_pad = _round_up(B, tb)

    if b_pad != B or in_pad != in_dim:
        xf = jnp.pad(xf, ((0, b_pad - B), (0, in_pad - in_dim)))

    flat_args = []
    in_specs = [pl.BlockSpec((tb, in_pad), lambda i: (i, 0))]        # streamed x
    for w, b in prepared_params:
        flat_args.append(w)
        in_specs.append(pl.BlockSpec(w.shape, lambda i: (0, 0)))     # resident
        flat_args.append(b)
        in_specs.append(pl.BlockSpec(b.shape, lambda i: (0, 0)))     # resident
    out_spec = pl.BlockSpec((tb, out_pad), lambda i: (i, 0))

    flops = 2 * b_pad * sum(int(w.shape[0]) * int(w.shape[1])
                            for w, _ in prepared_params)
    bytes_accessed = (
        b_pad * in_pad * 2                                            # bf16 x
        + sum(w.size * w.dtype.itemsize + b.size * b.dtype.itemsize
              for w, b in prepared_params)
        + b_pad * out_pad * 4)                                        # f32 out

    out = pl.pallas_call(
        _mlp_kernel,
        out_shape=jax.ShapeDtypeStruct((b_pad, out_pad), jnp.float32),
        grid=(b_pad // tb,),
        in_specs=in_specs,
        out_specs=out_spec,
        compiler_params=pltpu.CompilerParams(
            dimension_semantics=("parallel",),        # megacore split on v7x
            vmem_limit_bytes=int(budget)),
        cost_estimate=pl.CostEstimate(flops=flops, transcendentals=0,
                                      bytes_accessed=int(bytes_accessed)),
    )(xf, *flat_args)

    return out[:B, :out_dim]


# ----------------------------------------------------------------------------
# References for correctness checking.
# ----------------------------------------------------------------------------
def _reference_forward_f32(x, params):
    """Pure-f32 reference (matches the PyTorch module numerics)."""
    B = x.shape[0]
    h = x.reshape(B, -1).astype(jnp.float32)
    n = len(params)
    for i, (w, b) in enumerate(params):
        h = h @ jnp.transpose(w).astype(jnp.float32) + b.astype(jnp.float32)
        if i < n - 1:
            h = jnp.maximum(h, 0.0)
    return h


def _reference_forward_bf16(x, prepared_params, out_dim):
    """Mirrors the kernel numerics: bf16 matmul inputs, f32 accumulate,
    f32 bias/ReLU, padded lanes zero."""
    B = x.shape[0]
    h = x.reshape(B, -1).astype(jnp.float32)
    in_pad = prepared_params[0][0].shape[0]
    h = jnp.pad(h, ((0, 0), (0, in_pad - h.shape[1])))
    n = len(prepared_params)
    for i, (w, b) in enumerate(prepared_params):
        h = jnp.dot(h.astype(jnp.bfloat16), w,
                    preferred_element_type=jnp.float32) + b
        if i < n - 1:
            h = jnp.maximum(h, 0.0)
    return h[:, :out_dim]


if __name__ == "__main__":
    # Small shapes consistent with the module's forward:
    #   x: (B, C, H, W) -> flatten -> in_dim = C*H*W = 1024 (module default)
    B, C, H, W = 2, 4, 16, 16
    in_dim = C * H * W
    hidden_channels = 4 * [128]      # scaled-down analogue of 4 * [512]
    out_dim = 64                     # scaled-down analogue of 300 (padded to 128)

    key = jax.random.PRNGKey(0)
    kx, kp = jax.random.split(key)
    x = jax.random.normal(kx, (B, C, H, W), dtype=jnp.float32)

    params = init_explicit_decoder_params(kp, in_dim, hidden_channels, out_dim)
    prepared = prepare_params(params)   # one-time, outside jit

    y = explicit_decoder_forward(x, prepared, out_dim)
    y = jax.block_until_ready(y)
    assert y.shape == (B, out_dim), y.shape

    # Tight check against a reference that mirrors the kernel's bf16-MXU math.
    y_mirror = _reference_forward_bf16(x, prepared, out_dim)
    assert jnp.allclose(y, y_mirror, atol=2e-3, rtol=2e-3), (
        float(jnp.max(jnp.abs(y - y_mirror))))

    # Loose sanity check against the pure-f32 PyTorch-equivalent reference
    # (bf16 matmul inputs introduce small deviations).
    y_f32 = _reference_forward_f32(x, params)
    assert jnp.allclose(y, y_f32, atol=5e-2, rtol=5e-2), (
        float(jnp.max(jnp.abs(y - y_f32))))

    print("KERNEL_OK")
</pallas_src>

<mosaic_0001>
module attributes {stable_mosaic.version = 11 : i64} {
  func.func @_mlp_kernel(%arg0: i32, %arg1: memref<16x1024xbf16, #tpu.memory_space<vmem>>, %arg2: memref<1024x128xbf16, #tpu.memory_space<vmem>>, %arg3: memref<1x128xf32, #tpu.memory_space<vmem>>, %arg4: memref<128x128xbf16, #tpu.memory_space<vmem>>, %arg5: memref<1x128xf32, #tpu.memory_space<vmem>>, %arg6: memref<128x128xbf16, #tpu.memory_space<vmem>>, %arg7: memref<1x128xf32, #tpu.memory_space<vmem>>, %arg8: memref<128x128xbf16, #tpu.memory_space<vmem>>, %arg9: memref<1x128xf32, #tpu.memory_space<vmem>>, %arg10: memref<128x128xbf16, #tpu.memory_space<vmem>>, %arg11: memref<1x128xf32, #tpu.memory_space<vmem>>, %arg12: memref<16x128xf32, #tpu.memory_space<vmem>>) attributes {dimension_semantics = [#tpu.dimension_semantics<parallel>], iteration_bounds = array<i64: 1>, scalar_prefetch = 0 : i64, scratch_operands = 0 : i64, tpu.core_type = #tpu.core_type<tc>, window_params = [{transform_indices = @transform_0, window_bounds = array<i64: 16, 1024>}, {pipeline_mode = #tpu.pipeline_mode<synchronous>, transform_indices = @transform_1, window_bounds = array<i64: 1024, 128>}, {pipeline_mode = #tpu.pipeline_mode<synchronous>, transform_indices = @transform_2, window_bounds = array<i64: 1, 128>}, {pipeline_mode = #tpu.pipeline_mode<synchronous>, transform_indices = @transform_3, window_bounds = array<i64: 128, 128>}, {pipeline_mode = #tpu.pipeline_mode<synchronous>, transform_indices = @transform_4, window_bounds = array<i64: 1, 128>}, {pipeline_mode = #tpu.pipeline_mode<synchronous>, transform_indices = @transform_5, window_bounds = array<i64: 128, 128>}, {pipeline_mode = #tpu.pipeline_mode<synchronous>, transform_indices = @transform_6, window_bounds = array<i64: 1, 128>}, {pipeline_mode = #tpu.pipeline_mode<synchronous>, transform_indices = @transform_7, window_bounds = array<i64: 128, 128>}, {pipeline_mode = #tpu.pipeline_mode<synchronous>, transform_indices = @transform_8, window_bounds = array<i64: 1, 128>}, {pipeline_mode = #tpu.pipeline_mode<synchronous>, transform_indices = @transform_9, window_bounds = array<i64: 128, 128>}, {pipeline_mode = #tpu.pipeline_mode<synchronous>, transform_indices = @transform_10, window_bounds = array<i64: 1, 128>}, {transform_indices = @transform_11, window_bounds = array<i64: 16, 128>}]} {
    %c0 = arith.constant 0 : index
    %c0_0 = arith.constant 0 : index
    %0 = vector.load %arg1[%c0, %c0_0] : memref<16x1024xbf16, #tpu.memory_space<vmem>>, vector<16x1024xbf16>
    %c0_1 = arith.constant 0 : index
    %c0_2 = arith.constant 0 : index
    %1 = vector.load %arg2[%c0_1, %c0_2] : memref<1024x128xbf16, #tpu.memory_space<vmem>>, vector<1024x128xbf16>
    %cst = arith.constant dense<0.000000e+00> : vector<16x128xf32>
    %2 = tpu.matmul %0, %1, %cst {dimension_numbers = #tpu.dot_dimension_numbers<[1], [0], [0], [1], [0, 0, 1, 1], [], []>} : vector<16x1024xbf16>, vector<1024x128xbf16>, vector<16x128xf32> -> vector<16x128xf32>
    %c0_3 = arith.constant 0 : index
    %c0_4 = arith.constant 0 : index
    %3 = vector.load %arg3[%c0_3, %c0_4] : memref<1x128xf32, #tpu.memory_space<vmem>>, vector<1x128xf32>
    %4 = vector.broadcast %3 : vector<1x128xf32> to vector<16x128xf32>
    %5 = arith.addf %2, %4 : vector<16x128xf32>
    %cst_5 = arith.constant 0.000000e+00 : f32
    %6 = vector.broadcast %cst_5 : f32 to vector<16x128xf32>
    %7 = arith.maximumf %5, %6 : vector<16x128xf32>
    %8 = arith.truncf %7 : vector<16x128xf32> to vector<16x128xbf16>
    %c0_6 = arith.constant 0 : index
    %c0_7 = arith.constant 0 : index
    %9 = vector.load %arg4[%c0_6, %c0_7] : memref<128x128xbf16, #tpu.memory_space<vmem>>, vector<128x128xbf16>
    %cst_8 = arith.constant dense<0.000000e+00> : vector<16x128xf32>
    %10 = tpu.matmul %8, %9, %cst_8 {dimension_numbers = #tpu.dot_dimension_numbers<[1], [0], [0], [1], [0, 0, 1, 1], [], []>} : vector<16x128xbf16>, vector<128x128xbf16>, vector<16x128xf32> -> vector<16x128xf32>
    %c0_9 = arith.constant 0 : index
    %c0_10 = arith.constant 0 : index
    %11 = vector.load %arg5[%c0_9, %c0_10] : memref<1x128xf32, #tpu.memory_space<vmem>>, vector<1x128xf32>
    %12 = vector.broadcast %11 : vector<1x128xf32> to vector<16x128xf32>
    %13 = arith.addf %10, %12 : vector<16x128xf32>
    %cst_11 = arith.constant 0.000000e+00 : f32
    %14 = vector.broadcast %cst_11 : f32 to vector<16x128xf32>
    %15 = arith.maximumf %13, %14 : vector<16x128xf32>
    %16 = arith.truncf %15 : vector<16x128xf32> to vector<16x128xbf16>
    %c0_12 = arith.constant 0 : index
    %c0_13 = arith.constant 0 : index
    %17 = vector.load %arg6[%c0_12, %c0_13] : memref<128x128xbf16, #tpu.memory_space<vmem>>, vector<128x128xbf16>
    %cst_14 = arith.constant dense<0.000000e+00> : vector<16x128xf32>
    %18 = tpu.matmul %16, %17, %cst_14 {dimension_numbers = #tpu.dot_dimension_numbers<[1], [0], [0], [1], [0, 0, 1, 1], [], []>} : vector<16x128xbf16>, vector<128x128xbf16>, vector<16x128xf32> -> vector<16x128xf32>
    %c0_15 = arith.constant 0 : index
    %c0_16 = arith.constant 0 : index
    %19 = vector.load %arg7[%c0_15, %c0_16] : memref<1x128xf32, #tpu.memory_space<vmem>>, vector<1x128xf32>
    %20 = vector.broadcast %19 : vector<1x128xf32> to vector<16x128xf32>
    %21 = arith.addf %18, %20 : vector<16x128xf32>
    %cst_17 = arith.constant 0.000000e+00 : f32
    %22 = vector.broadcast %cst_17 : f32 to vector<16x128xf32>
    %23 = arith.maximumf %21, %22 : vector<16x128xf32>
    %24 = arith.truncf %23 : vector<16x128xf32> to vector<16x128xbf16>
    %c0_18 = arith.constant 0 : index
    %c0_19 = arith.constant 0 : index
    %25 = vector.load %arg8[%c0_18, %c0_19] : memref<128x128xbf16, #tpu.memory_space<vmem>>, vector<128x128xbf16>
    %cst_20 = arith.constant dense<0.000000e+00> : vector<16x128xf32>
    %26 = tpu.matmul %24, %25, %cst_20 {dimension_numbers = #tpu.dot_dimension_numbers<[1], [0], [0], [1], [0, 0, 1, 1], [], []>} : vector<16x128xbf16>, vector<128x128xbf16>, vector<16x128xf32> -> vector<16x128xf32>
    %c0_21 = arith.constant 0 : index
    %c0_22 = arith.constant 0 : index
    %27 = vector.load %arg9[%c0_21, %c0_22] : memref<1x128xf32, #tpu.memory_space<vmem>>, vector<1x128xf32>
    %28 = vector.broadcast %27 : vector<1x128xf32> to vector<16x128xf32>
    %29 = arith.addf %26, %28 : vector<16x128xf32>
    %cst_23 = arith.constant 0.000000e+00 : f32
    %30 = vector.broadcast %cst_23 : f32 to vector<16x128xf32>
    %31 = arith.maximumf %29, %30 : vector<16x128xf32>
    %32 = arith.truncf %31 : vector<16x128xf32> to vector<16x128xbf16>
    %c0_24 = arith.constant 0 : index
    %c0_25 = arith.constant 0 : index
    %33 = vector.load %arg10[%c0_24, %c0_25] : memref<128x128xbf16, #tpu.memory_space<vmem>>, vector<128x128xbf16>
    %cst_26 = arith.constant dense<0.000000e+00> : vector<16x128xf32>
    %34 = tpu.matmul %32, %33, %cst_26 {dimension_numbers = #tpu.dot_dimension_numbers<[1], [0], [0], [1], [0, 0, 1, 1], [], []>} : vector<16x128xbf16>, vector<128x128xbf16>, vector<16x128xf32> -> vector<16x128xf32>
    %c0_27 = arith.constant 0 : index
    %c0_28 = arith.constant 0 : index
    %35 = vector.load %arg11[%c0_27, %c0_28] : memref<1x128xf32, #tpu.memory_space<vmem>>, vector<1x128xf32>
    %36 = vector.broadcast %35 : vector<1x128xf32> to vector<16x128xf32>
    %37 = arith.addf %34, %36 : vector<16x128xf32>
    %c0_29 = arith.constant 0 : index
    %c0_30 = arith.constant 0 : index
    %38 = vector.load %arg12[%c0_29, %c0_30] : memref<16x128xf32, #tpu.memory_space<vmem>>, vector<16x128xf32>
    tpu.vector_store %arg12[%c0_29, %c0_30], %37 {strides = array<i32>} : memref<16x128xf32, #tpu.memory_space<vmem>>, vector<16x128xf32>,
    return
  }
  func.func @transform_0(%arg0: i32) -> (i32, i32) {
    %c0_i32 = arith.constant 0 : i32
    %c0_i32_0 = arith.constant 0 : i32
    return %arg0, %c0_i32 : i32, i32
  }
  func.func @transform_1(%arg0: i32) -> (i32, i32) {
    %c0_i32 = arith.constant 0 : i32
    %c0_i32_0 = arith.constant 0 : i32
    %c0_i32_1 = arith.constant 0 : i32
    return %c0_i32, %c0_i32_0 : i32, i32
  }
  func.func @transform_2(%arg0: i32) -> (i32, i32) {
    %c0_i32 = arith.constant 0 : i32
    %c0_i32_0 = arith.constant 0 : i32
    %c0_i32_1 = arith.constant 0 : i32
    return %c0_i32, %c0_i32_0 : i32, i32
  }
  func.func @transform_3(%arg0: i32) -> (i32, i32) {
    %c0_i32 = arith.constant 0 : i32
    %c0_i32_0 = arith.constant 0 : i32
    %c0_i32_1 = arith.constant 0 : i32
    return %c0_i32, %c0_i32_0 : i32, i32
  }
  func.func @transform_4(%arg0: i32) -> (i32, i32) {
    %c0_i32 = arith.constant 0 : i32
    %c0_i32_0 = arith.constant 0 : i32
    %c0_i32_1 = arith.constant 0 : i32
    return %c0_i32, %c0_i32_0 : i32, i32
  }
  func.func @transform_5(%arg0: i32) -> (i32, i32) {
    %c0_i32 = arith.constant 0 : i32
    %c0_i32_0 = arith.constant 0 : i32
    %c0_i32_1 = arith.constant 0 : i32
    return %c0_i32, %c0_i32_0 : i32, i32
  }
  func.func @transform_6(%arg0: i32) -> (i32, i32) {
    %c0_i32 = arith.constant 0 : i32
    %c0_i32_0 = arith.constant 0 : i32
    %c0_i32_1 = arith.constant 0 : i32
    return %c0_i32, %c0_i32_0 : i32, i32
  }
  func.func @transform_7(%arg0: i32) -> (i32, i32) {
    %c0_i32 = arith.constant 0 : i32
    %c0_i32_0 = arith.constant 0 : i32
    %c0_i32_1 = arith.constant 0 : i32
    return %c0_i32, %c0_i32_0 : i32, i32
  }
  func.func @transform_8(%arg0: i32) -> (i32, i32) {
    %c0_i32 = arith.constant 0 : i32
    %c0_i32_0 = arith.constant 0 : i32
    %c0_i32_1 = arith.constant 0 : i32
    return %c0_i32, %c0_i32_0 : i32, i32
  }
  func.func @transform_9(%arg0: i32) -> (i32, i32) {
    %c0_i32 = arith.constant 0 : i32
    %c0_i32_0 = arith.constant 0 : i32
    %c0_i32_1 = arith.constant 0 : i32
    return %c0_i32, %c0_i32_0 : i32, i32
  }
  func.func @transform_10(%arg0: i32) -> (i32, i32) {
    %c0_i32 = arith.constant 0 : i32
    %c0_i32_0 = arith.constant 0 : i32
    %c0_i32_1 = arith.constant 0 : i32
    return %c0_i32, %c0_i32_0 : i32, i32
  }
  func.func @transform_11(%arg0: i32) -> (i32, i32) {
    %c0_i32 = arith.constant 0 : i32
    %c0_i32_0 = arith.constant 0 : i32
    return %arg0, %c0_i32 : i32, i32
  }
}

</mosaic_0001>

<bundles_post_ra>
// kernel: explicit_decoder_forward.1
= control target key start
LH: loop header
LB: loop body
LE: loop exit
PB: predicated region body
PF: predicated region fallthrough
CT: control target
= control target key end

     0   :  { %16 = vsyncpa [#allocation3], 0  ;;  %s1689_s17 = smov [#allocation2]   ;;  %s1947_s0 = inlined_call_operand.vmem [shape: bf16[16,1024], index: 0, kind: input, shape index: {}]   ;;  %s1948_s1 = inlined_call_operand.hbm [shape: bf16[1024,128], index: 1, kind: input, shape index: {}]   ;;  %s1949_s2 = inlined_call_operand.vmem [shape: f32[1,128], index: 2, kind: input, shape index: {}]   ;;  %s1950_s3 = inlined_call_operand.vmem [shape: bf16[128,128], index: 3, kind: input, shape index: {}]   ;;  %s1951_s4 = inlined_call_operand.vmem [shape: f32[1,128], index: 4, kind: input, shape index: {}]   ;;  %s1952_s5 = inlined_call_operand.vmem [shape: bf16[128,128], index: 5, kind: input, shape index: {}]   ;;  %s1953_s6 = inlined_call_operand.vmem [shape: f32[1,128], index: 6, kind: input, shape index: {}]   ;;  %s1954_s7 = inlined_call_operand.vmem [shape: bf16[128,128], index: 7, kind: input, shape index: {}]   ;;  %s1955_s8 = inlined_call_operand.vmem [shape: f32[1,128], index: 8, kind: input, shape index: {}]   ;;  %s1956_s9 = inlined_call_operand.vmem [shape: bf16[128,128], index: 9, kind: input, shape index: {}]   ;;  %s1957_s10 = inlined_call_operand.vmem [shape: f32[1,128], index: 10, kind: input, shape index: {}]   ;;  %s1958_s11 = inlined_call_operand.vmem [shape: f32[16,128], index: 11, kind: output, shape index: {}]  }
   0x1   :  { %s24_s18 = sshll.u32 %s1689_s17, 4  ;;  %s1665_s21 = scalar_lea.hbm %s1948_s1, 8192  ;;  %s25_s18 = int_to_ptr.vmem [resolvable:$true] %s24_s18 }
   0x2   :  { %p1666_p0 = scmp.ne.s32.totalorder %s1948_s1, %s1665_s21  ;;  %p1669_p1 = scmp.lt.u32.totalorder %s1665_s21, %s1948_s1 }
   0x4   :  { %p1671_p2 = pnand %p1669_p1, %p1666_p0 }
   0x6   :  { %1674 = shalt.err (!%p1671_p2)
}
   0x7   :  { %s1675_s26 = scalar_lea.vmem %s25_s18, 8192  ;;  %p1680_p4 = scmp.lt.s32.totalorder %s25_s18, %s25_s18 }
   0x8   :  { %p1676_p3 = scmp.ne.s32.totalorder %s25_s18, %s1675_s26  ;;  %p1681_p5 = scmp.lt.s32.totalorder %s1675_s26, %s1675_s26 }
   0xa   :  { %p1682_p6 = por %p1681_p5, %p1680_p4 }
   0xc   :  { %p1683_p7 = pnand %p1682_p6, %p1676_p3 }
   0xe   :  { %1686 = shalt.err (!%p1683_p7)
}
   0xf   :  { %s1690_s27 = smov 64   ;;  %s1691_s28 = smov 4  }
  0x10   :  { %30 = dma.hbm_to_vmem [thread:$0]  %s1948_s1, 8192, %s25_s18, [#allocation3], %s1690_s27, %s1690_s27, %s1691_s28  }
  0x11   :  { %1687 = dma.done.wait [#allocation3], 8192  }
  0x12   :  { %1688 = vsyncadd [#allocation3], 4294959104  ;;  %v1569_v0 = vld [vmem:[#allocation2 + $0x40] sm:$0xff]   ;;  %v1573_v4 = vld [vmem:[#allocation2 + $0x48] sm:$0xff]   ;;  %vm1693_vm0 = vmmov 0  }
  0x13   :  { %v1570_v1 = vld [vmem:[#allocation2 + $0xc0] sm:$0xff]   ;;  %1360 = vmatprep.subr.bf16.mxu0 %v1569_v0  ;;  %v1574_v5 = vld [vmem:[#allocation2 + $0xc8] sm:$0xff]   ;;  %v1577_v8 = vld [vmem:[#allocation2 + $0x50] sm:$0xff]  }
  0x14   :  { %v1571_v2 = vld [vmem:[#allocation2] sm:$0xff]   ;;  %1382 = vmatprep.subr.bf16.mxu1 %v1570_v1  ;;  %v1575_v6 = vld [vmem:[#allocation2 + $0x8] sm:$0xff]   ;;  %v1578_v9 = vld [vmem:[#allocation2 + $0xd0] sm:$0xff]  }
  0x15   :  { %v1572_v3 = vld [vmem:[#allocation2 + $0x80] sm:$0xff]   ;;  %1361 = vmatpush3.bf16.msra.mxu0 %v1571_v2  ;;  %v1576_v7 = vld [vmem:[#allocation2 + $0x88] sm:$0xff]   ;;  %v1579_v10 = vld [vmem:[#allocation2 + $0x10] sm:$0xff]  }
  0x16   :  { %1383 = vmatpush3.bf16.msra.mxu1 %v1572_v3  ;;  %1362 = vmatprep.subr.bf16.mxu0 %v1573_v4  ;;  %v1580_v11 = vld [vmem:[#allocation2 + $0x90] sm:$0xff]   ;;  %v1581_v12 = vld [vmem:[#allocation2 + $0x58] sm:$0xff]   ;;  %v1585_v16 = vld [vmem:[#allocation2 + $0x60] sm:$0xff]  }
  0x17   :  { %1384 = vmatprep.subr.bf16.mxu1 %v1574_v5  ;;  %v1582_v13 = vld [vmem:[#allocation2 + $0xd8] sm:$0xff]   ;;  %v1586_v17 = vld [vmem:[#allocation2 + $0xe0] sm:$0xff]   ;;  %v1589_v20 = vld [vmem:[#allocation2 + $0x68] sm:$0xff]  }
  0x18   :  { %v1583_v14 = vld [vmem:[#allocation2 + $0x18] sm:$0xff]   ;;  %v1587_v18 = vld [vmem:[#allocation2 + $0x20] sm:$0xff]   ;;  %v1590_v21 = vld [vmem:[#allocation2 + $0xe8] sm:$0xff]  }
  0x19   :  { %1363 = vmatpush3.bf16.msra.mxu0 %v1575_v6  ;;  %v1584_v15 = vld [vmem:[#allocation2 + $0x98] sm:$0xff]   ;;  %v1588_v19 = vld [vmem:[#allocation2 + $0xa0] sm:$0xff]   ;;  %v1591_v22 = vld [vmem:[#allocation2 + $0x28] sm:$0xff]  }
  0x1a   :  { %1385 = vmatpush3.bf16.msra.mxu1 %v1576_v7  ;;  %1364 = vmatprep.subr.bf16.mxu0 %v1577_v8  ;;  %v1592_v23 = vld [vmem:[#allocation2 + $0xa8] sm:$0xff]   ;;  %v1593_v24 = vld [vmem:[#allocation2 + $0x70] sm:$0xff]   ;;  %v1597_v28 = vld [vmem:[#allocation2 + $0x78] sm:$0xff]  }
  0x1b   :  { %1386 = vmatprep.subr.bf16.mxu1 %v1578_v9  ;;  %v1594_v25 = vld [vmem:[#allocation2 + $0xf0] sm:$0xff]   ;;  %v1598_v29 = vld [vmem:[#allocation2 + $0xf8] sm:$0xff]   ;;  %v53_v32 = vld [vmem:[%s1947_s0] sm:$0xff] }
  0x1c   :  { %v1595_v26 = vld [vmem:[#allocation2 + $0x30] sm:$0xff]   ;;  %v1599_v30 = vld [vmem:[#allocation2 + $0x38] sm:$0xff]   ;;  %v57_v33 = vld [vmem:[%s1947_s0 + $0x20] sm:$0xff] }
  0x1d   :  { %1365 = vmatpush3.bf16.msra.mxu0 %v1579_v10  ;;  %v1596_v27 = vld [vmem:[#allocation2 + $0xb0] sm:$0xff]   ;;  %v1600_v31 = vld [vmem:[#allocation2 + $0xb8] sm:$0xff]   ;;  %v54_v34 = vld [vmem:[%s1947_s0 + $0x8] sm:$0xff]  ;;  %v1252_v35 = vcombine.low %v53_v32, %v57_v33  ;;  %v1253_v36 = vcombine.high %v53_v32, %v57_v33 }
  0x1e   :  { %1387 = vmatpush3.bf16.msra.mxu1 %v1580_v11  ;;  %1366 = vmatprep.subr.bf16.mxu0 %v1581_v12  ;;  %v58_v37 = vld [vmem:[%s1947_s0 + $0x28] sm:$0xff]  ;;  %v1601_v40 = vld [vmem:[#allocation2 + $0x140] sm:$0xff]   ;;  %v1609_v48 = vld [vmem:[#allocation2 + $0x150] sm:$0xff]  }
  0x1f   :  { %1388 = vmatprep.subr.bf16.mxu1 %v1582_v13  ;;  %v1254_v38 = vcombine.low %v54_v34, %v58_v37  ;;  %v1255_v39 = vcombine.high %v54_v34, %v58_v37  ;;  %652 = vmatprep.mubr.bf16.mxu0 %v1253_v36  ;;  %v1602_v41 = vld [vmem:[#allocation2 + $0x1c0] sm:$0xff]   ;;  %v1605_v44 = vld [vmem:[#allocation2 + $0x148] sm:$0xff]   ;;  %v1610_v49 = vld [vmem:[#allocation2 + $0x1d0] sm:$0xff]  }
  0x20   :  { %v1603_v42 = vld [vmem:[#allocation2 + $0x100] sm:$0xff]   ;;  %v1606_v45 = vld [vmem:[#allocation2 + $0x1c8] sm:$0xff]   ;;  %v1611_v50 = vld [vmem:[#allocation2 + $0x110] sm:$0xff]  }
  0x21   :  { %1367 = vmatpush3.bf16.msra.mxu0 %v1583_v14  ;;  %693 = vmatprep.mubr.bf16.mxu1 %v1255_v39  ;;  %v1604_v43 = vld [vmem:[#allocation2 + $0x180] sm:$0xff]   ;;  %v1607_v46 = vld [vmem:[#allocation2 + $0x108] sm:$0xff]   ;;  %v1612_v51 = vld [vmem:[#allocation2 + $0x190] sm:$0xff]  }
  0x22   :  { %1389 = vmatpush3.bf16.msra.mxu1 %v1584_v15  ;;  %1368 = vmatprep.subr.bf16.mxu0 %v1585_v16  ;;  %v1608_v47 = vld [vmem:[#allocation2 + $0x188] sm:$0xff]   ;;  %v1613_v52 = vld [vmem:[#allocation2 + $0x158] sm:$0xff]   ;;  %v1617_v56 = vld [vmem:[#allocation2 + $0x160] sm:$0xff]  }
  0x23   :  { %1390 = vmatprep.subr.bf16.mxu1 %v1586_v17  ;;  %v1614_v53 = vld [vmem:[#allocation2 + $0x1d8] sm:$0xff]   ;;  %v1618_v57 = vld [vmem:[#allocation2 + $0x1e0] sm:$0xff]   ;;  %v1621_v60 = vld [vmem:[#allocation2 + $0x168] sm:$0xff]   ;;  %v1692_v17 = vmov 0.0  }
  0x24   :  { %v1615_v54 = vld [vmem:[#allocation2 + $0x118] sm:$0xff]   ;;  %v1619_v58 = vld [vmem:[#allocation2 + $0x120] sm:$0xff]   ;;  %v1622_v61 = vld [vmem:[#allocation2 + $0x1e8] sm:$0xff]  }
  0x25   :  { %1369 = vmatpush3.bf16.msra.mxu0 %v1587_v18  ;;  %v1616_v55 = vld [vmem:[#allocation2 + $0x198] sm:$0xff]   ;;  %v1620_v59 = vld [vmem:[#allocation2 + $0x1a0] sm:$0xff]   ;;  %v1623_v62 = vld [vmem:[#allocation2 + $0x128] sm:$0xff]  }
  0x26   :  { %1391 = vmatpush3.bf16.msra.mxu1 %v1588_v19  ;;  %1370 = vmatprep.subr.bf16.mxu0 %v1589_v20  ;;  %v1624_v63 = vld [vmem:[#allocation2 + $0x1a8] sm:$0xff]   ;;  %v1625_v0 = vld [vmem:[#allocation2 + $0x170] sm:$0xff]   ;;  %v1629_v4 = vld [vmem:[#allocation2 + $0x178] sm:$0xff]  }
  0x27   :  { %1392 = vmatprep.subr.bf16.mxu1 %v1590_v21  ;;  %v1626_v1 = vld [vmem:[#allocation2 + $0x1f0] sm:$0xff]   ;;  %v1630_v5 = vld [vmem:[#allocation2 + $0x1f8] sm:$0xff]   ;;  %v1633_v16 = vld [vmem:[%s1950_s3] sm:$0xff]  }
  0x28   :  { %v1627_v2 = vld [vmem:[#allocation2 + $0x130] sm:$0xff]   ;;  %v1631_v6 = vld [vmem:[#allocation2 + $0x138] sm:$0xff]   ;;  %v1634_v18 = vld [vmem:[%s1950_s3 + $0x8] sm:$0xff]  }
  0x29   :  { %1371 = vmatpush3.bf16.msra.mxu0 %v1591_v22  ;;  %v1628_v3 = vld [vmem:[#allocation2 + $0x1b0] sm:$0xff]   ;;  %v1632_v7 = vld [vmem:[#allocation2 + $0x1b8] sm:$0xff]   ;;  %v1637_v21 = vld [vmem:[%s1950_s3 + $0x20] sm:$0xff]  }
  0x2a   :  { %1393 = vmatpush3.bf16.msra.mxu1 %v1592_v23  ;;  %1372 = vmatprep.subr.bf16.mxu0 %v1593_v24  ;;  %v55_v8 = vld [vmem:[%s1947_s0 + $0x10] sm:$0xff]  ;;  %v56_v12 = vld [vmem:[%s1947_s0 + $0x18] sm:$0xff]  ;;  %v1638_v22 = vld [vmem:[%s1950_s3 + $0x28] sm:$0xff]  }
  0x2b   :  { %1394 = vmatprep.subr.bf16.mxu1 %v1594_v25  ;;  %v59_v9 = vld [vmem:[%s1947_s0 + $0x30] sm:$0xff]  ;;  %v60_v13 = vld [vmem:[%s1947_s0 + $0x38] sm:$0xff]  ;;  %v1641_v25 = vld [vmem:[%s1952_s5] sm:$0xff]  }
  0x2c   :  { %v1256_v10 = vcombine.low %v55_v8, %v59_v9  ;;  %v1257_v11 = vcombine.high %v55_v8, %v59_v9  ;;  %v1258_v14 = vcombine.low %v56_v12, %v60_v13  ;;  %v1259_v15 = vcombine.high %v56_v12, %v60_v13  ;;  %v1635_v19 = vld [vmem:[%s1950_s3 + $0x10] sm:$0xff]   ;;  %v1636_v20 = vld [vmem:[%s1950_s3 + $0x18] sm:$0xff]   ;;  %v1251_v33 = vld [vmem:[%s1949_s2] ss:$0 sm:$0xff] }
  0x2d   :  { %1373 = vmatpush3.bf16.msra.mxu0 %v1595_v26  ;;  %v1639_v23 = vld [vmem:[%s1950_s3 + $0x30] sm:$0xff]   ;;  %v1640_v24 = vld [vmem:[%s1950_s3 + $0x38] sm:$0xff]   ;;  %v1642_v26 = vld [vmem:[%s1952_s5 + $0x8] sm:$0xff]  }
  0x2e   :  { %1395 = vmatpush3.bf16.msra.mxu1 %v1596_v27  ;;  %1374 = vmatprep.subr.bf16.mxu0 %v1597_v28  ;;  %v1643_v27 = vld [vmem:[%s1952_s5 + $0x10] sm:$0xff]   ;;  %v1644_v28 = vld [vmem:[%s1952_s5 + $0x18] sm:$0xff]   ;;  %v1653_v9 = vld [vmem:[%s1954_s7 + $0x20] sm:$0xff]  }
  0x2f   :  { %1396 = vmatprep.subr.bf16.mxu1 %v1598_v29  ;;  %v1645_v29 = vld [vmem:[%s1952_s5 + $0x20] sm:$0xff]   ;;  %v1652_v8 = vld [vmem:[%s1954_s7 + $0x18] sm:$0xff]  }
  0x31   :  { %1375 = vmatpush3.bf16.msra.mxu0 %v1599_v30  ;;  %v1646_v30 = vld [vmem:[%s1952_s5 + $0x28] sm:$0xff]  }
  0x32   :  { %1397 = vmatpush3.bf16.msra.mxu1 %v1600_v31  ;;  %1404 = vmatprep.subr.bf16.mxu0 %v1601_v40 }
  0x33   :  { %1426 = vmatprep.subr.bf16.mxu1 %v1602_v41 }
  0x34   :  { %653 = vmatmul.mubr.bf16.vlgmr.msra.gmra.mrb[0].mxu0 %v1252_v35 }
  0x35   :  { %694 = vmatmul.mubr.bf16.vlgmr.msra.gmra.mrb[0].mxu1 %v1254_v38  ;;  %1405 = vmatpush3.bf16.msra.mxu0 %v1603_v42 }
  0x36   :  { %1427 = vmatpush3.bf16.msra.mxu1 %v1604_v43  ;;  %1406 = vmatprep.subr.bf16.mxu0 %v1605_v44 }
  0x37   :  { %1428 = vmatprep.subr.bf16.mxu1 %v1606_v45  ;;  %734 = vmatprep.mubr.bf16.mxu0 %v1257_v11  ;;  %v1324_v11 = vld [vmem:[%s1951_s4] ss:$0 sm:$0xff] }
  0x38   :  { %775 = vmatprep.mubr.bf16.mxu1 %v1259_v15 }
  0x39   :  { %1407 = vmatpush3.bf16.msra.mxu0 %v1607_v46 }
  0x3a   :  { %1429 = vmatpush3.bf16.msra.mxu1 %v1608_v47  ;;  %1408 = vmatprep.subr.bf16.mxu0 %v1609_v48 }
  0x3b   :  { %1430 = vmatprep.subr.bf16.mxu1 %v1610_v49 }
  0x3d   :  { %1409 = vmatpush3.bf16.msra.mxu0 %v1611_v50 }
  0x3e   :  { %1431 = vmatpush3.bf16.msra.mxu1 %v1612_v51  ;;  %1410 = vmatprep.subr.bf16.mxu0 %v1613_v52 }
  0x3f   :  { %1432 = vmatprep.subr.bf16.mxu1 %v1614_v53 }
  0x41   :  { %1411 = vmatpush3.bf16.msra.mxu0 %v1615_v54 }
  0x42   :  { %1433 = vmatpush3.bf16.msra.mxu1 %v1616_v55  ;;  %1412 = vmatprep.subr.bf16.mxu0 %v1617_v56 }
  0x43   :  { %1434 = vmatprep.subr.bf16.mxu1 %v1618_v57 }
  0x45   :  { %1413 = vmatpush3.bf16.msra.mxu0 %v1619_v58 }
  0x46   :  { %1435 = vmatpush3.bf16.msra.mxu1 %v1620_v59  ;;  %1414 = vmatprep.subr.bf16.mxu0 %v1621_v60 }
  0x47   :  { %1436 = vmatprep.subr.bf16.mxu1 %v1622_v61 }
  0x49   :  { %1415 = vmatpush3.bf16.msra.mxu0 %v1623_v62 }
  0x4a   :  { %1437 = vmatpush3.bf16.msra.mxu1 %v1624_v63  ;;  %1416 = vmatprep.subr.bf16.mxu0 %v1625_v0 }
  0x4b   :  { %1438 = vmatprep.subr.bf16.mxu1 %v1626_v1 }
  0x4d   :  { %1417 = vmatpush3.bf16.msra.mxu0 %v1627_v2 }
  0x4e   :  { %1439 = vmatpush3.bf16.msra.mxu1 %v1628_v3  ;;  %1418 = vmatprep.subr.bf16.mxu0 %v1629_v4  ;;  %v1647_v3 = vld [vmem:[%s1952_s5 + $0x30] sm:$0xff]   ;;  %v1648_v4 = vld [vmem:[%s1952_s5 + $0x38] sm:$0xff]  }
  0x4f   :  { %1440 = vmatprep.subr.bf16.mxu1 %v1630_v5  ;;  %v1649_v5 = vld [vmem:[%s1954_s7] sm:$0xff]  }
  0x51   :  { %1419 = vmatpush3.bf16.msra.mxu0 %v1631_v6  ;;  %v1650_v6 = vld [vmem:[%s1954_s7 + $0x8] sm:$0xff]  }
  0x52   :  { %1441 = vmatpush3.bf16.msra.mxu1 %v1632_v7  ;;  %1484 = vmatprep.subr.bf16.mxu0 %v1692_v17  ;;  %v1651_v7 = vld [vmem:[%s1954_s7 + $0x10] sm:$0xff]  }
  0x53   :  { %1504 = vmatprep.subr.bf16.mxu1 %v1692_v17 }
  0x54   :  { %735 = vmatmul.mubr.bf16.vlgmr.msra.gmra.mrb[4].mxu0 %v1256_v10  ;;  %v1654_v10 = vld [vmem:[%s1954_s7 + $0x28] sm:$0xff]  }
  0x55   :  { %776 = vmatmul.mubr.bf16.vlgmr.msra.gmra.mrb[4].mxu1 %v1258_v14  ;;  %1485 = vmatpush3.bf16.msra.mxu0 %v1633_v16 }
  0x56   :  { %1486 = vmatprep.subr.bf16.mxu0 %v1692_v17  ;;  %1500 = vmatprep.mubr.msk.bf16.mxu0 %vm1693_vm0, %v1692_v17 }
  0x57   :  { %1520 = vmatprep.mubr.msk.bf16.mxu1 %vm1693_vm0, %v1692_v17  ;;  %1505 = vmatpush3.bf16.msra.mxu1 %v1641_v25  ;;  %v1658_v25 = vld [vmem:[%s1956_s9 + $0x8] sm:$0xff]  }
  0x58   :  { %1506 = vmatprep.subr.bf16.mxu1 %v1692_v17 }
  0x59   :  { %1487 = vmatpush3.bf16.msra.mxu0 %v1634_v18 }
  0x5a   :  { %1488 = vmatprep.subr.bf16.mxu0 %v1692_v17 }
  0x5b   :  { %1507 = vmatpush3.bf16.msra.mxu1 %v1642_v26  ;;  %v1659_v26 = vld [vmem:[%s1956_s9 + $0x10] sm:$0xff]  }
  0x5c   :  { %1508 = vmatprep.subr.bf16.mxu1 %v1692_v17 }
  0x5d   :  { %1489 = vmatpush3.bf16.msra.mxu0 %v1635_v19 }
  0x5e   :  { %1490 = vmatprep.subr.bf16.mxu0 %v1692_v17 }
  0x5f   :  { %1509 = vmatpush3.bf16.msra.mxu1 %v1643_v27  ;;  %v1660_v27 = vld [vmem:[%s1956_s9 + $0x18] sm:$0xff]  }
  0x60   :  { %1510 = vmatprep.subr.bf16.mxu1 %v1692_v17 }
  0x61   :  { %1491 = vmatpush3.bf16.msra.mxu0 %v1636_v20 }
  0x62   :  { %1492 = vmatprep.subr.bf16.mxu0 %v1692_v17 }
  0x63   :  { %1511 = vmatpush3.bf16.msra.mxu1 %v1644_v28  ;;  %v1661_v28 = vld [vmem:[%s1956_s9 + $0x20] sm:$0xff]  }
  0x64   :  { %1512 = vmatprep.subr.bf16.mxu1 %v1692_v17 }
  0x65   :  { %1493 = vmatpush3.bf16.msra.mxu0 %v1637_v21 }
  0x66   :  { %1494 = vmatprep.subr.bf16.mxu0 %v1692_v17 }
  0x67   :  { %1513 = vmatpush3.bf16.msra.mxu1 %v1645_v29  ;;  %v1662_v29 = vld [vmem:[%s1956_s9 + $0x28] sm:$0xff]  }
  0x68   :  { %1514 = vmatprep.subr.bf16.mxu1 %v1692_v17 }
  0x69   :  { %1495 = vmatpush3.bf16.msra.mxu0 %v1638_v22  ;;  %v1655_v22 = vld [vmem:[%s1954_s7 + $0x30] sm:$0xff]  }
  0x6a   :  { %1496 = vmatprep.subr.bf16.mxu0 %v1692_v17 }
  0x6b   :  { %1515 = vmatpush3.bf16.msra.mxu1 %v1646_v30  ;;  %v1333_v30 = vld [vmem:[%s1953_s6] ss:$0 sm:$0xff] }
  0x6c   :  { %1516 = vmatprep.subr.bf16.mxu1 %v1692_v17 }
  0x6d   :  { %1497 = vmatpush3.bf16.msra.mxu0 %v1639_v23  ;;  %v1656_v23 = vld [vmem:[%s1954_s7 + $0x38] sm:$0xff]  }
  0x6e   :  { %1498 = vmatprep.subr.bf16.mxu0 %v1692_v17 }
  0x6f   :  { %1517 = vmatpush3.bf16.msra.mxu1 %v1647_v3 }
  0x70   :  { %1518 = vmatprep.subr.bf16.mxu1 %v1692_v17 }
  0x71   :  { %1499 = vmatpush3.bf16.msra.mxu0 %v1640_v24  ;;  %v1657_v24 = vld [vmem:[%s1956_s9] sm:$0xff]  }
  0x72   :  { %1524 = vmatprep.subr.bf16.mxu0 %v1692_v17 }
  0x73   :  { %1519 = vmatpush3.bf16.msra.mxu1 %v1648_v4 }
  0x74   :  { %1544 = vmatprep.subr.bf16.mxu1 %v1692_v17 }
 0x107   :  { %v1376_v31 = vpop.f32.mrb[0].mxu0 }
 0x108   :  { %v1398_v32 = vpop.f32.mrb[0].mxu1  ;;  %v1377_v34 = vpop.f32.mrb[1].mxu0 }
 0x109   :  { %v1378_v35 = vadd.f32 %v1377_v34, %v1376_v31  ;;  %v1399_v36 = vpop.f32.mrb[1].mxu1  ;;  %v1379_v37 = vpop.f32.mrb[2].mxu0 }
 0x10a   :  { %v1400_v38 = vadd.f32 %v1399_v36, %v1398_v32  ;;  %v1401_v39 = vpop.f32.mrb[2].mxu1  ;;  %v1380_v40 = vpop.f32.mrb[3].mxu0 }
 0x10b   :  { %v655_v41 = vadd.f32 %v1378_v35, %v1251_v33  ;;  %v1381_v42 = vadd.f32 %v1380_v40, %v1379_v37  ;;  %v1402_v43 = vpop.f32.mrb[3].mxu1  ;;  %v1663_v40 = vld [vmem:[%s1956_s9 + $0x30] sm:$0xff]  }
 0x10c   :  { %v1403_v44 = vadd.f32 %v1402_v43, %v1401_v39 }
 0x10d   :  { %v696_v45 = vadd.f32 %v1400_v38, %v655_v41  ;;  %v658_v46 = vadd.f32 %v1381_v42, %v1251_v33  ;;  %v1664_v41 = vld [vmem:[%s1956_s9 + $0x38] sm:$0xff]   ;;  %v1342_v42 = vld [vmem:[%s1955_s8] ss:$0 sm:$0xff] }
 0x10f   :  { %v699_v47 = vadd.f32 %v1403_v44, %v658_v46 }
 0x127   :  { %v1420_v48 = vpop.f32.mrb[4].mxu0 }
 0x128   :  { %v1442_v49 = vpop.f32.mrb[4].mxu1  ;;  %v1421_v50 = vpop.f32.mrb[5].mxu0 }
 0x129   :  { %v1422_v51 = vadd.f32 %v1421_v50, %v1420_v48  ;;  %v1443_v52 = vpop.f32.mrb[5].mxu1  ;;  %v1423_v53 = vpop.f32.mrb[6].mxu0 }
 0x12a   :  { %v1444_v54 = vadd.f32 %v1443_v52, %v1442_v49  ;;  %v1445_v55 = vpop.f32.mrb[6].mxu1  ;;  %v1424_v56 = vpop.f32.mrb[7].mxu0 }
 0x12b   :  { %v737_v57 = vadd.f32 %v1422_v51, %v696_v45  ;;  %v1425_v58 = vadd.f32 %v1424_v56, %v1423_v53  ;;  %v1446_v59 = vpop.f32.mrb[7].mxu1 }
 0x12c   :  { %v1447_v60 = vadd.f32 %v1446_v59, %v1445_v55 }
 0x12d   :  { %v778_v61 = vadd.f32 %v1444_v54, %v737_v57  ;;  %v740_v62 = vadd.f32 %v1425_v58, %v699_v47 }
 0x12f   :  { %v781_v63 = vadd.f32 %v1447_v60, %v740_v62  ;;  %v784_v0 = vmax.f32 %v778_v61, 0.0 }
 0x131   :  { %v785_v1 = vmax.f32 %v781_v63, 0.0 }
 0x133   :  { %v786_v2 = vpack.c.bf16 %v785_v1, %v784_v0 }
 0x135   :  { %1501 = vmatmul.mubr.bf16.vlgmr.msra.gmra.mrb[8].mxu0 %v786_v2 }
 0x136   :  { %1540 = vmatprep.mubr.msk.bf16.mxu0 %vm1693_vm0, %v1692_v17  ;;  %1525 = vmatpush3.bf16.msra.mxu0 %v1649_v5 }
 0x137   :  { %1526 = vmatprep.subr.bf16.mxu0 %v1692_v17 }
 0x13a   :  { %1527 = vmatpush3.bf16.msra.mxu0 %v1650_v6 }
 0x13b   :  { %1528 = vmatprep.subr.bf16.mxu0 %v1692_v17 }
 0x13e   :  { %1529 = vmatpush3.bf16.msra.mxu0 %v1651_v7 }
 0x13f   :  { %1530 = vmatprep.subr.bf16.mxu0 %v1692_v17 }
 0x142   :  { %1531 = vmatpush3.bf16.msra.mxu0 %v1652_v8 }
 0x143   :  { %1532 = vmatprep.subr.bf16.mxu0 %v1692_v17 }
 0x146   :  { %1533 = vmatpush3.bf16.msra.mxu0 %v1653_v9 }
 0x147   :  { %1534 = vmatprep.subr.bf16.mxu0 %v1692_v17 }
 0x14a   :  { %1535 = vmatpush3.bf16.msra.mxu0 %v1654_v10 }
 0x14b   :  { %1536 = vmatprep.subr.bf16.mxu0 %v1692_v17 }
 0x14e   :  { %1537 = vmatpush3.bf16.msra.mxu0 %v1655_v22 }
 0x14f   :  { %1538 = vmatprep.subr.bf16.mxu0 %v1692_v17 }
 0x152   :  { %1539 = vmatpush3.bf16.msra.mxu0 %v1656_v23 }
 0x208   :  { %v892_v12 = vpop.f32.mrb[8].mxu0 }
 0x209   :  { %v893_v13 = vadd.f32 %v1324_v11, %v892_v12  ;;  %v1502_v14 = vpop.f32.mrb[9].mxu0 }
 0x20a   :  { %v895_v15 = vpop.f32.mrb[10].mxu0 }
 0x20b   :  { %v896_v16 = vadd.f32 %v1324_v11, %v895_v15  ;;  %v1503_v18 = vpop.f32.mrb[11].mxu0  ;;  %v899_v19 = vmax.f32 %v893_v13, 0.0 }
 0x20d   :  { %v900_v20 = vmax.f32 %v896_v16, 0.0 }
 0x20f   :  { %v901_v21 = vpack.c.bf16 %v900_v20, %v899_v19 }
 0x211   :  { %1521 = vmatmul.mubr.bf16.vlgmr.msra.gmra.mrb[8].mxu1 %v901_v21 }
 0x212   :  { %1560 = vmatprep.mubr.msk.bf16.mxu1 %vm1693_vm0, %v1692_v17  ;;  %1545 = vmatpush3.bf16.msra.mxu1 %v1657_v24 }
 0x213   :  { %1546 = vmatprep.subr.bf16.mxu1 %v1692_v17 }
 0x216   :  { %1547 = vmatpush3.bf16.msra.mxu1 %v1658_v25 }
 0x217   :  { %1548 = vmatprep.subr.bf16.mxu1 %v1692_v17 }
 0x21a   :  { %1549 = vmatpush3.bf16.msra.mxu1 %v1659_v26 }
 0x21b   :  { %1550 = vmatprep.subr.bf16.mxu1 %v1692_v17 }
 0x21e   :  { %1551 = vmatpush3.bf16.msra.mxu1 %v1660_v27 }
 0x21f   :  { %1552 = vmatprep.subr.bf16.mxu1 %v1692_v17 }
 0x222   :  { %1553 = vmatpush3.bf16.msra.mxu1 %v1661_v28 }
 0x223   :  { %1554 = vmatprep.subr.bf16.mxu1 %v1692_v17 }
 0x226   :  { %1555 = vmatpush3.bf16.msra.mxu1 %v1662_v29 }
 0x227   :  { %1556 = vmatprep.subr.bf16.mxu1 %v1692_v17 }
 0x22a   :  { %1557 = vmatpush3.bf16.msra.mxu1 %v1663_v40 }
 0x22b   :  { %1558 = vmatprep.subr.bf16.mxu1 %v1692_v17  ;;  %v1351_v17 = vld [vmem:[%s1957_s10] ss:$0 sm:$0xff] }
 0x22e   :  { %1559 = vmatpush3.bf16.msra.mxu1 %v1664_v41 }
 0x2e4   :  { %v1007_v31 = vpop.f32.mrb[8].mxu1 }
 0x2e5   :  { %v1008_v32 = vadd.f32 %v1333_v30, %v1007_v31  ;;  %v1522_v33 = vpop.f32.mrb[9].mxu1 }
 0x2e6   :  { %v1010_v34 = vpop.f32.mrb[10].mxu1 }
 0x2e7   :  { %v1011_v35 = vadd.f32 %v1333_v30, %v1010_v34  ;;  %v1523_v36 = vpop.f32.mrb[11].mxu1  ;;  %v1014_v37 = vmax.f32 %v1008_v32, 0.0 }
 0x2e9   :  { %v1015_v38 = vmax.f32 %v1011_v35, 0.0 }
 0x2eb   :  { %v1016_v39 = vpack.c.bf16 %v1015_v38, %v1014_v37 }
 0x2ed   :  { %1541 = vmatmul.mubr.bf16.vlgmr.msra.gmra.mrb[12].mxu0 %v1016_v39 }
 0x3c0   :  { %v1122_v43 = vpop.f32.mrb[12].mxu0 }
 0x3c1   :  { %v1123_v44 = vadd.f32 %v1342_v42, %v1122_v43  ;;  %v1542_v45 = vpop.f32.mrb[13].mxu0 }
 0x3c2   :  { %v1125_v46 = vpop.f32.mrb[14].mxu0 }
 0x3c3   :  { %v1126_v47 = vadd.f32 %v1342_v42, %v1125_v46  ;;  %v1543_v48 = vpop.f32.mrb[15].mxu0  ;;  %v1129_v49 = vmax.f32 %v1123_v44, 0.0 }
 0x3c5   :  { %v1130_v50 = vmax.f32 %v1126_v47, 0.0 }
 0x3c7   :  { %v1131_v51 = vpack.c.bf16 %v1130_v50, %v1129_v49 }
 0x3c9   :  { %1561 = vmatmul.mubr.bf16.vlgmr.msra.gmra.mrb[12].mxu1 %v1131_v51 }
 0x49c   :  { %v1237_v52 = vpop.f32.mrb[12].mxu1 }
 0x49d   :  { %v1238_v53 = vadd.f32 %v1351_v17, %v1237_v52  ;;  %v1562_v54 = vpop.f32.mrb[13].mxu1 }
 0x49e   :  { %v1240_v55 = vpop.f32.mrb[14].mxu1 }
 0x49f   :  { %1244 = vst [vmem:[%s1958_s11] sm:$0xff] %v1238_v53  ;;  %v1241_v56 = vadd.f32 %v1351_v17, %v1240_v55  ;;  %v1563_v57 = vpop.f32.mrb[15].mxu1 }
 0x4a1   :  { %1245 = vst [vmem:[%s1958_s11 + $0x8] sm:$0xff] %v1241_v56 }
 0x4a2   :  { %1250 = vsyncpa [#allocation3], 1 }

</bundles_post_ra>
